<compile_context>
chip_gen: v7x
topology: tpu7x:2x2x1
jax: 0.10.0
libtpu: 0.0.40
codegen_flags: <defaults>
</compile_context>

<pallas_src>
import functools

import jax
import jax.numpy as jnp
from jax.experimental import pallas as pl
from jax.experimental.pallas import tpu as pltpu


def _lora_qkv_kernel(x_ref, wqkv_ref, bias_ref, wa_ref, wb_ref, o_ref):
    """One M-tile of rows: fused qkv projection + LoRA q/v updates.

    x_ref    : (TM, C)       input rows (native dtype, bf16 or f32)
    wqkv_ref : (C, 3C)       Wqkv^T
    bias_ref : (1, 3C)       qkv bias (f32)
    wa_ref   : (C, 2r)       [Aq^T | Av^T]
    wb_ref   : (2r, 3C)      [scale*Bq^T | 0 | 0 ; 0 | 0 | scale*Bv^T]
    o_ref    : (TM, 3C)      output rows
    """
    x = x_ref[...]                                             # keep native dtype

    # Base qkv projection, f32 accumulation.
    qkv = jnp.dot(x, wqkv_ref[...], preferred_element_type=jnp.float32)
    qkv = qkv + bias_ref[...]                                  # (TM, 3C) f32

    # Rank-r "A-side" projections for q and v in one small matmul.
    lo = jnp.dot(x, wa_ref[...], preferred_element_type=jnp.float32)   # (TM, 2r)

    # "B-side" matmul with pre-scaled block weights; k columns come out zero,
    # so the whole delta can be added and stored densely in one go.
    delta = jnp.dot(lo.astype(wb_ref.dtype), wb_ref[...],
                    preferred_element_type=jnp.float32)        # (TM, 3C)

    o_ref[...] = (qkv + delta).astype(o_ref.dtype)


def _round_up(x: int, m: int) -> int:
    return ((x + m - 1) // m) * m


def lora_qkv_forward(x, w_qkv, b_qkv, a_q, b_q, a_v, b_v,
                     alpha: int, r: int, *, tm: int = 256,
                     compute_dtype=None):
    """Fused LoRA qkv forward.

    x      : (B, N, C)
    w_qkv  : (3C, C)   nn.Linear weight (out, in)
    b_qkv  : (3C,)
    a_q    : (r, C)    linear_a_q.weight
    b_q    : (C, r)    linear_b_q.weight
    a_v    : (r, C)    linear_a_v.weight
    b_v    : (C, r)    linear_b_v.weight
    Returns (B, N, 3C) in x.dtype.
    """
    B, N, C = x.shape
    M = B * N
    scale = float(alpha // r)          # matches PyTorch integer floor-division
    cdt = compute_dtype if compute_dtype is not None else x.dtype

    # --- weight prep (done once, outside the kernel) -----------------------
    wqkv_t = w_qkv.T.astype(cdt)                                   # (C, 3C)
    wa = jnp.concatenate([a_q.T, a_v.T], axis=1).astype(cdt)       # (C, 2r)
    zero_rc = jnp.zeros((r, C), dtype=jnp.float32)
    wb = jnp.concatenate(
        [jnp.concatenate([scale * b_q.T.astype(jnp.float32), zero_rc, zero_rc],
                         axis=1),                                  # q rows
         jnp.concatenate([zero_rc, zero_rc,
                          scale * b_v.T.astype(jnp.float32)], axis=1)],  # v rows
        axis=0).astype(cdt)                                        # (2r, 3C)
    bias2d = b_qkv.reshape(1, 3 * C).astype(jnp.float32)

    # --- row tiling / padding ----------------------------------------------
    tm_eff = min(tm, _round_up(M, 8))          # multiple of 8 sublanes
    m_pad = _round_up(M, tm_eff)
    x2 = x.reshape(M, C).astype(cdt)
    if m_pad != M:
        x2 = jnp.pad(x2, ((0, m_pad - M), (0, 0)))
    grid = (m_pad // tm_eff,)

    out = pl.pallas_call(
        _lora_qkv_kernel,
        out_shape=jax.ShapeDtypeStruct((m_pad, 3 * C), x.dtype),
        grid=grid,
        in_specs=[
            pl.BlockSpec((tm_eff, C), lambda i: (i, 0)),          # x rows
            pl.BlockSpec((C, 3 * C), lambda i: (0, 0)),           # Wqkv^T
            pl.BlockSpec((1, 3 * C), lambda i: (0, 0)),           # bias
            pl.BlockSpec((C, 2 * r), lambda i: (0, 0)),           # [Aq^T | Av^T]
            pl.BlockSpec((2 * r, 3 * C), lambda i: (0, 0)),       # scaled B block
        ],
        out_specs=pl.BlockSpec((tm_eff, 3 * C), lambda i: (i, 0)),
        compiler_params=pltpu.CompilerParams(
            dimension_semantics=("parallel",),
            vmem_limit_bytes=48 * 1024 * 1024,
        ),
    )(x2, wqkv_t, bias2d, wa, wb)

    return out[:M].reshape(B, N, 3 * C)


if __name__ == "__main__":
    # Small shapes consistent with the module: x is (B, N, C).
    B, N, C = 2, 8, 32
    r, alpha = 4, 8

    key = jax.random.PRNGKey(0)
    kx, kw, kb, kaq, kbq, kav, kbv = jax.random.split(key, 7)

    x = jax.random.normal(kx, (B, N, C), dtype=jnp.float32)

    # nn.Linear weight convention: (out_features, in_features).
    w_qkv = jax.random.normal(kw, (3 * C, C), dtype=jnp.float32) * 0.05
    b_qkv = jax.random.normal(kb, (3 * C,), dtype=jnp.float32) * 0.05
    a_q = jax.random.normal(kaq, (r, C), dtype=jnp.float32) * 0.05   # linear_a_q
    b_q = jax.random.normal(kbq, (C, r), dtype=jnp.float32) * 0.05   # linear_b_q
    a_v = jax.random.normal(kav, (r, C), dtype=jnp.float32) * 0.05   # linear_a_v
    b_v = jax.random.normal(kbv, (C, r), dtype=jnp.float32) * 0.05   # linear_b_v

    out = lora_qkv_forward(x, w_qkv, b_qkv, a_q, b_q, a_v, b_v, alpha, r)
    out = jax.block_until_ready(out)

    # Plain-JAX reference of the exact PyTorch semantics.
    scale = alpha // r
    qkv_ref = jnp.einsum("bnc,oc->bno", x, w_qkv) + b_qkv
    new_q = jnp.einsum("bnr,or->bno", jnp.einsum("bnc,rc->bnr", x, a_q), b_q)
    new_v = jnp.einsum("bnr,or->bno", jnp.einsum("bnc,rc->bnr", x, a_v), b_v)
    qkv_ref = qkv_ref.at[:, :, :C].add(scale * new_q)
    qkv_ref = qkv_ref.at[:, :, -C:].add(scale * new_v)

    assert out.shape == (B, N, 3 * C)
    assert jnp.allclose(out, qkv_ref, atol=2e-3, rtol=2e-3), (
        float(jnp.max(jnp.abs(out - qkv_ref))))
    print("KERNEL_OK")
</pallas_src>

<mosaic_0001>
module attributes {stable_mosaic.version = 11 : i64} {
  func.func @_lora_qkv_kernel(%arg0: i32, %arg1: memref<16x32xf32, #tpu.memory_space<vmem>>, %arg2: memref<32x96xf32, #tpu.memory_space<vmem>>, %arg3: memref<1x96xf32, #tpu.memory_space<vmem>>, %arg4: memref<32x8xf32, #tpu.memory_space<vmem>>, %arg5: memref<8x96xf32, #tpu.memory_space<vmem>>, %arg6: memref<16x96xf32, #tpu.memory_space<vmem>>) attributes {dimension_semantics = [#tpu.dimension_semantics<parallel>], iteration_bounds = array<i64: 1>, scalar_prefetch = 0 : i64, scratch_operands = 0 : i64, tpu.core_type = #tpu.core_type<tc>, window_params = [{transform_indices = @transform_0, window_bounds = array<i64: 16, 32>}, {pipeline_mode = #tpu.pipeline_mode<synchronous>, transform_indices = @transform_1, window_bounds = array<i64: 32, 96>}, {pipeline_mode = #tpu.pipeline_mode<synchronous>, transform_indices = @transform_2, window_bounds = array<i64: 1, 96>}, {pipeline_mode = #tpu.pipeline_mode<synchronous>, transform_indices = @transform_3, window_bounds = array<i64: 32, 8>}, {pipeline_mode = #tpu.pipeline_mode<synchronous>, transform_indices = @transform_4, window_bounds = array<i64: 8, 96>}, {transform_indices = @transform_5, window_bounds = array<i64: 16, 96>}]} {
    %c0 = arith.constant 0 : index
    %c0_0 = arith.constant 0 : index
    %0 = vector.load %arg1[%c0, %c0_0] : memref<16x32xf32, #tpu.memory_space<vmem>>, vector<16x32xf32>
    %c0_1 = arith.constant 0 : index
    %c0_2 = arith.constant 0 : index
    %1 = vector.load %arg2[%c0_1, %c0_2] : memref<32x96xf32, #tpu.memory_space<vmem>>, vector<32x96xf32>
    %cst = arith.constant dense<0.000000e+00> : vector<16x96xf32>
    %2 = tpu.matmul %0, %1, %cst {dimension_numbers = #tpu.dot_dimension_numbers<[1], [0], [0], [1], [0, 0, 1, 1], [], []>} : vector<16x32xf32>, vector<32x96xf32>, vector<16x96xf32> -> vector<16x96xf32>
    %c0_3 = arith.constant 0 : index
    %c0_4 = arith.constant 0 : index
    %3 = vector.load %arg3[%c0_3, %c0_4] : memref<1x96xf32, #tpu.memory_space<vmem>>, vector<1x96xf32>
    %4 = vector.broadcast %3 : vector<1x96xf32> to vector<16x96xf32>
    %5 = arith.addf %2, %4 : vector<16x96xf32>
    %c0_5 = arith.constant 0 : index
    %c0_6 = arith.constant 0 : index
    %6 = vector.load %arg4[%c0_5, %c0_6] : memref<32x8xf32, #tpu.memory_space<vmem>>, vector<32x8xf32>
    %cst_7 = arith.constant dense<0.000000e+00> : vector<16x8xf32>
    %7 = tpu.matmul %0, %6, %cst_7 {dimension_numbers = #tpu.dot_dimension_numbers<[1], [0], [0], [1], [0, 0, 1, 1], [], []>} : vector<16x32xf32>, vector<32x8xf32>, vector<16x8xf32> -> vector<16x8xf32>
    %c0_8 = arith.constant 0 : index
    %c0_9 = arith.constant 0 : index
    %8 = vector.load %arg5[%c0_8, %c0_9] : memref<8x96xf32, #tpu.memory_space<vmem>>, vector<8x96xf32>
    %cst_10 = arith.constant dense<0.000000e+00> : vector<16x96xf32>
    %9 = tpu.matmul %7, %8, %cst_10 {dimension_numbers = #tpu.dot_dimension_numbers<[1], [0], [0], [1], [0, 0, 1, 1], [], []>} : vector<16x8xf32>, vector<8x96xf32>, vector<16x96xf32> -> vector<16x96xf32>
    %10 = arith.addf %5, %9 : vector<16x96xf32>
    %c0_11 = arith.constant 0 : index
    %c0_12 = arith.constant 0 : index
    %11 = vector.load %arg6[%c0_11, %c0_12] : memref<16x96xf32, #tpu.memory_space<vmem>>, vector<16x96xf32>
    tpu.vector_store %arg6[%c0_11, %c0_12], %10 {strides = array<i32>} : memref<16x96xf32, #tpu.memory_space<vmem>>, vector<16x96xf32>,
    return
  }
  func.func @transform_0(%arg0: i32) -> (i32, i32) {
    %c0_i32 = arith.constant 0 : i32
    %c0_i32_0 = arith.constant 0 : i32
    return %arg0, %c0_i32 : i32, i32
  }
  func.func @transform_1(%arg0: i32) -> (i32, i32) {
    %c0_i32 = arith.constant 0 : i32
    %c0_i32_0 = arith.constant 0 : i32
    %c0_i32_1 = arith.constant 0 : i32
    return %c0_i32, %c0_i32_0 : i32, i32
  }
  func.func @transform_2(%arg0: i32) -> (i32, i32) {
    %c0_i32 = arith.constant 0 : i32
    %c0_i32_0 = arith.constant 0 : i32
    %c0_i32_1 = arith.constant 0 : i32
    return %c0_i32, %c0_i32_0 : i32, i32
  }
  func.func @transform_3(%arg0: i32) -> (i32, i32) {
    %c0_i32 = arith.constant 0 : i32
    %c0_i32_0 = arith.constant 0 : i32
    %c0_i32_1 = arith.constant 0 : i32
    return %c0_i32, %c0_i32_0 : i32, i32
  }
  func.func @transform_4(%arg0: i32) -> (i32, i32) {
    %c0_i32 = arith.constant 0 : i32
    %c0_i32_0 = arith.constant 0 : i32
    %c0_i32_1 = arith.constant 0 : i32
    return %c0_i32, %c0_i32_0 : i32, i32
  }
  func.func @transform_5(%arg0: i32) -> (i32, i32) {
    %c0_i32 = arith.constant 0 : i32
    %c0_i32_0 = arith.constant 0 : i32
    return %arg0, %c0_i32 : i32, i32
  }
}

</mosaic_0001>

<bundles_post_ra>
// kernel: tpu_custom_call.1
= control target key start
LH: loop header
LB: loop body
LE: loop exit
PB: predicated region body
PF: predicated region fallthrough
CT: control target
= control target key end

     0   :  { %10 = vsyncpa [#allocation3], 0  ;;  %s533_s0 = inlined_call_operand.hbm [shape: f32[16,32], index: 0, kind: input, shape index: {}]   ;;  %s534_s1 = inlined_call_operand.vmem [shape: f32[32,96], index: 1, kind: input, shape index: {}]   ;;  %s535_s2 = inlined_call_operand.vmem [shape: f32[1,96], index: 2, kind: input, shape index: {}]   ;;  %s536_s3 = inlined_call_operand.vmem [shape: f32[32,8], index: 3, kind: input, shape index: {}]   ;;  %s537_s4 = inlined_call_operand.vmem [shape: f32[8,96], index: 4, kind: input, shape index: {}]   ;;  %s538_s5 = inlined_call_operand.hbm [shape: f32[16,96], index: 5, kind: output, shape index: {}]  }
   0x1   :  { %11 = vsyncpa [#allocation4], 0  ;;  %s435_s18 = smov [#allocation2]   ;;  %s387_s22 = scalar_lea.hbm %s533_s0, 256 }
   0x2   :  { %s17_s19 = sshll.u32 %s435_s18, 4  ;;  %p388_p0 = scmp.ne.s32.totalorder %s533_s0, %s387_s22  ;;  %s18_s19 = int_to_ptr.vmem [resolvable:$true] %s17_s19 }
   0x3   :  { %p391_p1 = scmp.lt.u32.totalorder %s387_s22, %s533_s0 }
   0x5   :  { %p393_p2 = pnand %p391_p1, %p388_p0 }
   0x7   :  { %396 = shalt.err (!%p393_p2)
}
   0x8   :  { %s397_s27 = scalar_lea.vmem %s18_s19, 256  ;;  %p402_p4 = scmp.lt.s32.totalorder %s18_s19, %s18_s19 }
   0x9   :  { %p398_p3 = scmp.ne.s32.totalorder %s18_s19, %s397_s27  ;;  %p403_p5 = scmp.lt.s32.totalorder %s397_s27, %s397_s27 }
   0xb   :  { %p404_p6 = por %p403_p5, %p402_p4 }
   0xd   :  { %p405_p7 = pnand %p404_p6, %p398_p3 }
   0xf   :  { %408 = shalt.err (!%p405_p7)
}
  0x10   :  { %s436_s28 = smov 128   ;;  %s437_s29 = smov 8  }
  0x11   :  { %23 = dma.hbm_to_vmem [thread:$0]  %s533_s0, 256, %s18_s19, [#allocation3], %s436_s28, %s436_s28, %s437_s29  }
  0x12   :  { %431 = dma.done.wait [#allocation3], 256  }
  0x13   :  { %432 = vsyncadd [#allocation3], 4294967040  ;;  %vm48_vm0 = vcmask 261120   ;;  %v130_v0 = vld [vmem:[%s536_s3] sm:$0xff]  ;;  %v131_v1 = vld [vmem:[%s536_s3 + $0x8] sm:$0xff]  ;;  %vm210_vm1 = vcmask 64512  }
  0x14   :  { %v132_v2 = vld [vmem:[%s536_s3 + $0x10] sm:$0xff]  ;;  %v371_v3 = vpack.c.bf16 %v131_v1, %v130_v0  ;;  %v133_v4 = vld [vmem:[%s536_s3 + $0x18] sm:$0xff]  ;;  %v35_v5 = vld [vmem:[#allocation2] sm:$0xff]  ;;  %s438_s24 = smov [#allocation5]   ;;  %vm294_vm2 = vcmask 785408  }
  0x15   :  { %v375_v6 = vpack.c.bf16 %v133_v4, %v132_v2  ;;  %355 = vmatprep.mubr.msk.f32.mxu1 %vm48_vm0, %v35_v5  ;;  %v37_v7 = vld [vmem:[%s534_s1] sm:$0xff]  ;;  %v38_v8 = vld [vmem:[%s534_s1 + $0x8] sm:$0xff]  ;;  %v39_v9 = vld [vmem:[%s534_s1 + $0x10] sm:$0xff]  ;;  %344 = vmatprep.mubr.msk.f32.mxu0 %vm48_vm0, %v35_v5  ;;  %s302_s25 = sshll.u32 %s438_s24, 4  ;;  %s303_s25 = int_to_ptr.vmem [resolvable:$true] %s302_s25 }
  0x16   :  { %372 = vmatprep.subr.bf16.mxu1 %v371_v3  ;;  %v363_v10 = vpack.c.bf16 %v38_v8, %v37_v7  ;;  %v40_v11 = vld [vmem:[%s534_s1 + $0x18] sm:$0xff]  ;;  %v36_v13 = vld [vmem:[#allocation2 + $0x8] sm:$0xff]  ;;  %v209_v14 = vld [vmem:[%s537_s4] sm:$0xff]  ;;  %s409_s4 = scalar_lea.vmem %s303_s25, 256  ;;  %p414_p9 = scmp.lt.s32.totalorder %s303_s25, %s303_s25 }
  0x17   :  { %374 = vmatpush3.bf16.msra.mxu1 %v371_v3  ;;  %v367_v12 = vpack.c.bf16 %v40_v11, %v39_v9  ;;  %v314_v17 = vld [vmem:[%s535_s2] ss:$0 sm:$0xff]  ;;  %p410_p8 = scmp.ne.s32.totalorder %s303_s25, %s409_s4  ;;  %p415_p10 = scmp.lt.s32.totalorder %s409_s4, %s409_s4 }
  0x18   :  { %376 = vmatprep.subr.bf16.mxu1 %v375_v6  ;;  %364 = vmatprep.subr.bf16.mxu0 %v363_v10 }
  0x19   :  { %366 = vmatpush3.bf16.msra.mxu0 %v363_v10  ;;  %p416_p11 = por %p415_p10, %p414_p9 }
  0x1a   :  { %368 = vmatprep.subr.bf16.mxu0 %v367_v12 }
  0x1b   :  { %378 = vmatpush3.bf16.msra.mxu1 %v375_v6  ;;  %p417_p12 = pnand %p416_p11, %p410_p8 }
  0x1d   :  { %370 = vmatpush3.bf16.msra.mxu0 %v367_v12 }
  0x1e   :  { %356 = vmatmul.mubr.msk.f32.vlgmr.msra.gmra.mrb[0].mxu1 %vm48_vm0, %v36_v13  ;;  %358 = vmatprep.subr.mxu0 %v209_v14 }
  0x20   :  { %345 = vmatmul.mubr.msk.f32.vlgmr.msra.gmra.mrb[0].mxu0 %vm48_vm0, %v36_v13 }
  0x21   :  { %359 = vmatpush3.msra.mxu0 %v209_v14 }
  0xf1   :  { %v357_v15 = vpop.f32.mrb[0].mxu1 }
  0xf2   :  { %v200_v16 = vpop.f32.mrb[1].mxu1 }
  0xf3   :  { %360 = vmatprep.mubr.msk.f32.mxu0 %vm210_vm1, %v200_v16 }
  0xf4   :  { %361 = vmatmul.mubr.msk.f32.vlgmr.msra.gmra.mrb[0].mxu0 %vm210_vm1, %v357_v15 }
 0x1c7   :  { %v362_v18 = vpop.f32.mrb[0].mxu0 }
 0x1c8   :  { %v379_v19 = vadd.f32 %v362_v18, %v314_v17  ;;  %v283_v20 = vpop.f32.mrb[1].mxu0 }
 0x1c9   :  { %v380_v21 = vadd.f32 %v314_v17, %v283_v20 }
 0x1ca   :  { %296 = vst.msk [vmem:[#allocation5 + $0x8] sm:$0xff] %vm294_vm2, %v379_v19 }
 0x1cb   :  { %295 = vst.msk [vmem:[#allocation5] sm:$0xff] %vm294_vm2, %v380_v21 }
 0x1cc   :  { %420 = shalt.err (!%p417_p12)
}
 0x1cd   :  { %s421_s2 = scalar_lea.hbm %s538_s5, 256 }
 0x1ce   :  { %p422_p13 = scmp.ne.s32.totalorder %s538_s5, %s421_s2  ;;  %p425_p0 = scmp.lt.u32.totalorder %s421_s2, %s538_s5 }
 0x1d0   :  { %p427_p1 = pnand %p425_p0, %p422_p13 }
 0x1d2   :  { %430 = shalt.err (!%p427_p1)
}
 0x1d3   :  { %308 = dma.vmem_to_hbm [thread:$0]  %s303_s25, 256, %s538_s5, [#allocation4], %s436_s28, %s436_s28, %s437_s29  }
 0x1d4   :  { %433 = dma.done.wait [#allocation4], 256  }
 0x1d5   :  { %434 = vsyncadd [#allocation4], 4294967040 }
 0x1d6   :  { %312 = vsyncpa [#allocation3], 1 }
 0x1d7   :  { %313 = vsyncpa [#allocation4], 1 }

</bundles_post_ra>
